<compile_context>
chip_gen: v5e
topology: v5e:2x2
jax: 0.10.0
libtpu: 0.0.40
codegen_flags: <defaults>
</compile_context>

<pallas_src>
import jax
import jax.numpy as jnp
from jax import lax
from jax.experimental import pallas as pl
from jax.experimental.pallas import tpu as pltpu


def _round_up(x, m):
    return ((x + m - 1) // m) * m


def _mlp_kernel(x_ref, w1_ref, b1_ref, w2_ref, b2_ref, w3_ref, b3_ref, o_ref):
    # x_ref: (TB, D) f32 (native layout); w*: (out, in) f32; b*: (out, 1) f32.
    # o_ref: (4, TB) f32 (batch-on-lanes -> dense, unmasked stores).
    x = x_ref[...]

    # Contract over x's minor dim: (64, D) x (TB, D)^T -> (64, TB).
    h1 = lax.dot_general(
        w1_ref[...], x, (((1,), (1,)), ((), ())),
        preferred_element_type=jnp.float32) + b1_ref[...]
    h1 = jnp.maximum(h1, 0.0)

    h2 = jnp.dot(w2_ref[...], h1, preferred_element_type=jnp.float32) + b2_ref[...]
    h2 = jnp.maximum(h2, 0.0)

    logits = jnp.dot(w3_ref[...], h2, preferred_element_type=jnp.float32) + b3_ref[...]
    o_ref[...] = jax.nn.sigmoid(logits)


def health_predictor(x, params, *, tb_cap=16384):
    """x: (B, input_dim) float32 -> (B, 4) float32.

    params: PyTorch-layout (out, in) weights and (out, 1) biases, float32.
    tb_cap: max batch-tile rows per grid step (16384 f32 rows -> ~2 MiB x tile,
            double-buffered well under even v5e's 16 MiB scoped VMEM default).
    """
    w1, b1, w2, b2, w3, b3 = params
    B, D = x.shape

    # --- tiling: pad batch only to ~128 granularity, keep >=2 tiles for v7x ---
    b128 = _round_up(max(B, 1), 128)
    min_tiles = 2 if b128 >= 256 else 1          # both TensorCores when possible
    n_tiles = max(min_tiles, pl.cdiv(b128, tb_cap))
    tb = _round_up(pl.cdiv(b128, n_tiles), 128)  # 128-lane aligned tile
    b_pad = n_tiles * tb                         # waste bounded by ~n_tiles*128 rows

    if b_pad != B:
        x = jnp.pad(x, ((0, b_pad - B), (0, 0)))

    grid = (n_tiles,)
    x_spec = pl.BlockSpec((tb, D), lambda i: (i, 0))       # native (B, D) stream
    out_spec = pl.BlockSpec((4, tb), lambda i: (0, i))     # lane-dense output
    const = lambda shape: pl.BlockSpec(shape, lambda i: (0, 0))  # VMEM-resident

    # Bandwidth-dominated op: tell XLA the real (tiny) FLOP count.
    flops_per_row = 2 * (D * 64 + 64 * 32 + 32 * 4)
    bytes_accessed = (
        b_pad * D * 4                                            # f32 x read
        + (w1.size + w2.size + w3.size) * 4                      # f32 weights
        + (b1.size + b2.size + b3.size) * 4                      # f32 biases
        + b_pad * 4 * 4                                          # f32 output write
    )
    cost = pl.CostEstimate(
        flops=flops_per_row * b_pad,
        transcendentals=4 * b_pad,
        bytes_accessed=int(bytes_accessed),
    )

    out_t = pl.pallas_call(
        _mlp_kernel,
        out_shape=jax.ShapeDtypeStruct((4, b_pad), jnp.float32),
        grid=grid,
        in_specs=[
            x_spec,
            const(w1.shape), const(b1.shape),
            const(w2.shape), const(b2.shape),
            const(w3.shape), const(b3.shape),
        ],
        out_specs=out_spec,
        compiler_params=pltpu.CompilerParams(
            dimension_semantics=("parallel",),  # megacore sharding on v7x
        ),
        cost_estimate=cost,
    )(x, w1, b1, w2, b2, w3, b3)

    # Strip batch padding, return (B, 4) to match the PyTorch module.
    return out_t[:, :B].T


def init_params(input_dim, key):
    """Deterministic init matching nn.Linear (PyTorch (out, in) weight layout)."""
    ks = jax.random.split(key, 6)

    def linear(kw, kb, fan_in, fan_out):
        bound = 1.0 / jnp.sqrt(jnp.float32(fan_in))
        w = jax.random.uniform(kw, (fan_out, fan_in), jnp.float32, -bound, bound)
        b = jax.random.uniform(kb, (fan_out, 1), jnp.float32, -bound, bound)
        return w, b

    w1, b1 = linear(ks[0], ks[1], input_dim, 64)
    w2, b2 = linear(ks[2], ks[3], 64, 32)
    w3, b3 = linear(ks[4], ks[5], 32, 4)
    return (w1, b1, w2, b2, w3, b3)


def _reference(x, params):
    """Pure-JAX f32 reference (same math as the PyTorch module)."""
    w1, b1, w2, b2, w3, b3 = params
    h1 = jnp.maximum(x @ w1.T + b1.T, 0.0)
    h2 = jnp.maximum(h1 @ w2.T + b2.T, 0.0)
    return jax.nn.sigmoid(h2 @ w3.T + b3.T)


if __name__ == "__main__":
    input_dim = 32
    batch = 8

    key = jax.random.PRNGKey(0)
    k_x, k_p = jax.random.split(key)
    x = jax.random.normal(k_x, (batch, input_dim), jnp.float32)
    params = init_params(input_dim, k_p)

    out = health_predictor(x, params)
    jax.block_until_ready(out)

    ref = _reference(x, params)
    assert out.shape == (batch, 4)
    assert jnp.allclose(out, ref, atol=2e-3, rtol=2e-3), "mismatch vs reference"

    print("KERNEL_OK")
</pallas_src>

<mosaic_0001>
module attributes {stable_mosaic.version = 11 : i64} {
  func.func @_mlp_kernel(%arg0: i32, %arg1: memref<128x32xf32, #tpu.memory_space<vmem>>, %arg2: memref<64x32xf32, #tpu.memory_space<vmem>>, %arg3: memref<64x1xf32, #tpu.memory_space<vmem>>, %arg4: memref<32x64xf32, #tpu.memory_space<vmem>>, %arg5: memref<32x1xf32, #tpu.memory_space<vmem>>, %arg6: memref<4x32xf32, #tpu.memory_space<vmem>>, %arg7: memref<4x1xf32, #tpu.memory_space<vmem>>, %arg8: memref<4x128xf32, #tpu.memory_space<vmem>>) attributes {dimension_semantics = [#tpu.dimension_semantics<parallel>], iteration_bounds = array<i64: 1>, scalar_prefetch = 0 : i64, scratch_operands = 0 : i64, tpu.core_type = #tpu.core_type<tc>, window_params = [{transform_indices = @transform_0, window_bounds = array<i64: 128, 32>}, {pipeline_mode = #tpu.pipeline_mode<synchronous>, transform_indices = @transform_1, window_bounds = array<i64: 64, 32>}, {pipeline_mode = #tpu.pipeline_mode<synchronous>, transform_indices = @transform_2, window_bounds = array<i64: 64, 1>}, {pipeline_mode = #tpu.pipeline_mode<synchronous>, transform_indices = @transform_3, window_bounds = array<i64: 32, 64>}, {pipeline_mode = #tpu.pipeline_mode<synchronous>, transform_indices = @transform_4, window_bounds = array<i64: 32, 1>}, {pipeline_mode = #tpu.pipeline_mode<synchronous>, transform_indices = @transform_5, window_bounds = array<i64: 4, 32>}, {pipeline_mode = #tpu.pipeline_mode<synchronous>, transform_indices = @transform_6, window_bounds = array<i64: 4, 1>}, {transform_indices = @transform_7, window_bounds = array<i64: 4, 128>}]} {
    %c0 = arith.constant 0 : index
    %c0_0 = arith.constant 0 : index
    %0 = vector.load %arg1[%c0, %c0_0] : memref<128x32xf32, #tpu.memory_space<vmem>>, vector<128x32xf32>
    %c0_1 = arith.constant 0 : index
    %c0_2 = arith.constant 0 : index
    %1 = vector.load %arg2[%c0_1, %c0_2] : memref<64x32xf32, #tpu.memory_space<vmem>>, vector<64x32xf32>
    %cst = arith.constant dense<0.000000e+00> : vector<64x128xf32>
    %2 = tpu.matmul %1, %0, %cst {dimension_numbers = #tpu.dot_dimension_numbers<[1], [1], [0], [0], [0, 0, 1, 0], [], []>} : vector<64x32xf32>, vector<128x32xf32>, vector<64x128xf32> -> vector<64x128xf32>
    %c0_3 = arith.constant 0 : index
    %c0_4 = arith.constant 0 : index
    %3 = vector.load %arg3[%c0_3, %c0_4] : memref<64x1xf32, #tpu.memory_space<vmem>>, vector<64x1xf32>
    %4 = vector.broadcast %3 : vector<64x1xf32> to vector<64x128xf32>
    %5 = arith.addf %2, %4 : vector<64x128xf32>
    %cst_5 = arith.constant 0.000000e+00 : f32
    %6 = vector.broadcast %cst_5 : f32 to vector<64x128xf32>
    %7 = arith.maximumf %5, %6 : vector<64x128xf32>
    %c0_6 = arith.constant 0 : index
    %c0_7 = arith.constant 0 : index
    %8 = vector.load %arg4[%c0_6, %c0_7] : memref<32x64xf32, #tpu.memory_space<vmem>>, vector<32x64xf32>
    %cst_8 = arith.constant dense<0.000000e+00> : vector<32x128xf32>
    %9 = tpu.matmul %8, %7, %cst_8 {dimension_numbers = #tpu.dot_dimension_numbers<[1], [0], [0], [1], [0, 0, 1, 1], [], []>} : vector<32x64xf32>, vector<64x128xf32>, vector<32x128xf32> -> vector<32x128xf32>
    %c0_9 = arith.constant 0 : index
    %c0_10 = arith.constant 0 : index
    %10 = vector.load %arg5[%c0_9, %c0_10] : memref<32x1xf32, #tpu.memory_space<vmem>>, vector<32x1xf32>
    %11 = vector.broadcast %10 : vector<32x1xf32> to vector<32x128xf32>
    %12 = arith.addf %9, %11 : vector<32x128xf32>
    %cst_11 = arith.constant 0.000000e+00 : f32
    %13 = vector.broadcast %cst_11 : f32 to vector<32x128xf32>
    %14 = arith.maximumf %12, %13 : vector<32x128xf32>
    %c0_12 = arith.constant 0 : index
    %c0_13 = arith.constant 0 : index
    %15 = vector.load %arg6[%c0_12, %c0_13] : memref<4x32xf32, #tpu.memory_space<vmem>>, vector<4x32xf32>
    %cst_14 = arith.constant dense<0.000000e+00> : vector<4x128xf32>
    %16 = tpu.matmul %15, %14, %cst_14 {dimension_numbers = #tpu.dot_dimension_numbers<[1], [0], [0], [1], [0, 0, 1, 1], [], []>} : vector<4x32xf32>, vector<32x128xf32>, vector<4x128xf32> -> vector<4x128xf32>
    %c0_15 = arith.constant 0 : index
    %c0_16 = arith.constant 0 : index
    %17 = vector.load %arg7[%c0_15, %c0_16] : memref<4x1xf32, #tpu.memory_space<vmem>>, vector<4x1xf32>
    %18 = vector.broadcast %17 : vector<4x1xf32> to vector<4x128xf32>
    %19 = arith.addf %16, %18 : vector<4x128xf32>
    %20 = arith.negf %19 : vector<4x128xf32>
    %21 = math.exp %20 : vector<4x128xf32>
    %cst_17 = arith.constant 1.000000e+00 : f32
    %22 = vector.broadcast %cst_17 : f32 to vector<4x128xf32>
    %23 = arith.addf %22, %21 : vector<4x128xf32>
    %24 = arith.divf %22, %23 : vector<4x128xf32>
    %c0_18 = arith.constant 0 : index
    %c0_19 = arith.constant 0 : index
    %25 = vector.load %arg8[%c0_18, %c0_19] : memref<4x128xf32, #tpu.memory_space<vmem>>, vector<4x128xf32>
    tpu.vector_store %arg8[%c0_18, %c0_19], %24 {strides = array<i32>} : memref<4x128xf32, #tpu.memory_space<vmem>>, vector<4x128xf32>,
    return
  }
  func.func @transform_0(%arg0: i32) -> (i32, i32) {
    %c0_i32 = arith.constant 0 : i32
    %c0_i32_0 = arith.constant 0 : i32
    return %arg0, %c0_i32 : i32, i32
  }
  func.func @transform_1(%arg0: i32) -> (i32, i32) {
    %c0_i32 = arith.constant 0 : i32
    %c0_i32_0 = arith.constant 0 : i32
    %c0_i32_1 = arith.constant 0 : i32
    return %c0_i32, %c0_i32_0 : i32, i32
  }
  func.func @transform_2(%arg0: i32) -> (i32, i32) {
    %c0_i32 = arith.constant 0 : i32
    %c0_i32_0 = arith.constant 0 : i32
    %c0_i32_1 = arith.constant 0 : i32
    return %c0_i32, %c0_i32_0 : i32, i32
  }
  func.func @transform_3(%arg0: i32) -> (i32, i32) {
    %c0_i32 = arith.constant 0 : i32
    %c0_i32_0 = arith.constant 0 : i32
    %c0_i32_1 = arith.constant 0 : i32
    return %c0_i32, %c0_i32_0 : i32, i32
  }
  func.func @transform_4(%arg0: i32) -> (i32, i32) {
    %c0_i32 = arith.constant 0 : i32
    %c0_i32_0 = arith.constant 0 : i32
    %c0_i32_1 = arith.constant 0 : i32
    return %c0_i32, %c0_i32_0 : i32, i32
  }
  func.func @transform_5(%arg0: i32) -> (i32, i32) {
    %c0_i32 = arith.constant 0 : i32
    %c0_i32_0 = arith.constant 0 : i32
    %c0_i32_1 = arith.constant 0 : i32
    return %c0_i32, %c0_i32_0 : i32, i32
  }
  func.func @transform_6(%arg0: i32) -> (i32, i32) {
    %c0_i32 = arith.constant 0 : i32
    %c0_i32_0 = arith.constant 0 : i32
    %c0_i32_1 = arith.constant 0 : i32
    return %c0_i32, %c0_i32_0 : i32, i32
  }
  func.func @transform_7(%arg0: i32) -> (i32, i32) {
    %c0_i32 = arith.constant 0 : i32
    %c0_i32_0 = arith.constant 0 : i32
    return %c0_i32, %arg0 : i32, i32
  }
}

</mosaic_0001>

<bundles_post_ra>
// kernel: tpu_custom_call.1
= control target key start
LH: loop header
LB: loop body
LE: loop exit
PB: predicated region body
PF: predicated region fallthrough
CT: control target
= control target key end

     0   :  { %vm99_vm0 = vcmask 261120   ;;  %s686_s0 = inlined_call_operand.vmem [shape: f32[128,32], index: 0, kind: input, shape index: {}]   ;;  %s687_s1 = inlined_call_operand.vmem [shape: f32[64,32], index: 1, kind: input, shape index: {}]   ;;  %s688_s2 = inlined_call_operand.vmem [shape: f32[64,1], index: 2, kind: input, shape index: {}]   ;;  %s689_s3 = inlined_call_operand.vmem [shape: f32[32,64], index: 3, kind: input, shape index: {}]   ;;  %s690_s4 = inlined_call_operand.vmem [shape: f32[32,1], index: 4, kind: input, shape index: {}]   ;;  %s691_s5 = inlined_call_operand.vmem [shape: f32[4,32], index: 5, kind: input, shape index: {}]   ;;  %s692_s6 = inlined_call_operand.vmem [shape: f32[4,1], index: 6, kind: input, shape index: {}]   ;;  %s693_s7 = inlined_call_operand.hbm [shape: f32[4,128], index: 7, kind: output, shape index: {}]  }
   0x1   :  { %v42_v0 = vld [vmem:[%s686_s0 + $0x78] sm:$0xff]  ;;  %v41_v1 = vld [vmem:[%s686_s0 + $0x70] sm:$0xff] }
   0x2   :  { %391 = vmatpush.xpose.msk.msra.mxu2 %vm99_vm0, %v42_v0  ;;  %392 = vmatpush.xpose.msk.msra.mxu3 %vm99_vm0, %v42_v0 }
   0x3   :  { %361 = vmatpush.xpose.msk.msra.mxu0 %vm99_vm0, %v42_v0 }
   0x4   :  { %12 = vsyncpa [#allocation3], 0  ;;  %v40_v2 = vld [vmem:[%s686_s0 + $0x68] sm:$0xff]  ;;  %v39_v3 = vld [vmem:[%s686_s0 + $0x60] sm:$0xff]  ;;  %v458_v9 = vmov 0   ;;  %vm249_vm1 = vcmask 523264  }
   0x5   :  { %v38_v4 = vld [vmem:[%s686_s0 + $0x58] sm:$0xff]  ;;  %v37_v5 = vld [vmem:[%s686_s0 + $0x50] sm:$0xff]  ;;  %v36_v6 = vld [vmem:[%s686_s0 + $0x48] sm:$0xff]  ;;  %425 = vset.pattern.permute.xlu0 %v458_v9  ;;  %426 = vset.pattern.permute.xlu1 %v458_v9  ;;  %s459_s9 = smov [#allocation2]   ;;  %s352_s12 = sshll.u32 %s693_s7, 4  ;;  %s353_s12 = int_to_ptr.hbm [resolvable:$true] %s352_s12 }
   0x6   :  { %393 = vmatpush.xpose.msk.msra.mxu2 %vm99_vm0, %v41_v1  ;;  %394 = vmatpush.xpose.msk.msra.mxu3 %vm99_vm0, %v41_v1  ;;  %v35_v7 = vld [vmem:[%s686_s0 + $0x40] sm:$0xff]  ;;  %v34_v8 = vld [vmem:[%s686_s0 + $0x38] sm:$0xff]  ;;  %v33_v11 = vld [vmem:[%s686_s0 + $0x30] sm:$0xff] }
   0x7   :  { %362 = vmatpush.xpose.msk.msra.mxu0 %vm99_vm0, %v41_v1  ;;  %427 = vset.pattern.permute.xlu2 %v458_v9  ;;  %v58_v10 = vld [vmem:[%s688_s2 + $0x38] sm:$0xff]  ;;  %v32_v12 = vld [vmem:[%s686_s0 + $0x28] sm:$0xff]  ;;  %v57_v13 = vld [vmem:[%s688_s2 + $0x30] sm:$0xff] }
   0x8   :  { %96 = vperm.xlu0 %425, %v58_v10   ;;  %v31_v14 = vld [vmem:[%s686_s0 + $0x20] sm:$0xff]  ;;  %v30_v15 = vld [vmem:[%s686_s0 + $0x18] sm:$0xff]  ;;  %v52_v16 = vld [vmem:[%s688_s2 + $0x8] sm:$0xff] }
   0x9   :  { %v56_v17 = vld [vmem:[%s688_s2 + $0x28] sm:$0xff]  ;;  %v29_v18 = vld [vmem:[%s686_s0 + $0x10] sm:$0xff]  ;;  %v55_v20 = vld [vmem:[%s688_s2 + $0x20] sm:$0xff] }
   0xa   :  { %395 = vmatpush.xpose.msk.msra.mxu2 %vm99_vm0, %v40_v2  ;;  %396 = vmatpush.xpose.msk.msra.mxu3 %vm99_vm0, %v40_v2  ;;  %v28_v19 = vld [vmem:[%s686_s0 + $0x8] sm:$0xff]  ;;  %v227_v21 = vld [vmem:[%s690_s4 + $0x10] sm:$0xff]  ;;  %v27_v22 = vld [vmem:[%s686_s0] sm:$0xff] }
   0xb   :  { %363 = vmatpush.xpose.msk.msra.mxu0 %vm99_vm0, %v40_v2  ;;  %86 = vperm.xlu1 %426, %v56_v17   ;;  %v44_v23 = vld [vmem:[%s687_s1 + $0x8] sm:$0xff]  ;;  %v49_v24 = vld [vmem:[%s687_s1 + $0x30] sm:$0xff]  ;;  %v43_v25 = vld [vmem:[%s687_s1] sm:$0xff] }
   0xc   :  { %v51_v26 = vld [vmem:[%s688_s2] sm:$0xff]  ;;  %v54_v28 = vld [vmem:[%s688_s2 + $0x18] sm:$0xff]  ;;  %v45_v29 = vld [vmem:[%s687_s1 + $0x10] sm:$0xff] }
   0xd   :  { %v296_v27 = vld [vmem:[%s692_s6] sm:$0xf]  ;;  %76 = vperm.xlu2 %427, %v54_v28   ;;  %v50_v30 = vld [vmem:[%s687_s1 + $0x38] sm:$0xff]  ;;  %v53_v31 = vld [vmem:[%s688_s2 + $0x10] sm:$0xff] }
   0xe   :  { %397 = vmatpush.xpose.msk.msra.mxu2 %vm99_vm0, %v39_v3  ;;  %398 = vmatpush.xpose.msk.msra.mxu3 %vm99_vm0, %v39_v3  ;;  %v226_v32 = vld [vmem:[%s690_s4 + $0x8] sm:$0xff]  ;;  %v46_v33 = vld [vmem:[%s687_s1 + $0x18] sm:$0xff]  ;;  %v47_v35 = vld [vmem:[%s687_s1 + $0x20] sm:$0xff] }
   0xf   :  { %364 = vmatpush.xpose.msk.msra.mxu0 %vm99_vm0, %v39_v3  ;;  %v228_v34 = vld [vmem:[%s690_s4 + $0x18] sm:$0xff]  ;;  %v225_v36 = vld [vmem:[%s690_s4] sm:$0xff]  ;;  %v48_v37 = vld [vmem:[%s687_s1 + $0x28] sm:$0xff] }
  0x10   :  { %91 = vperm.xlu0 %425, %v57_v13   ;;  %v224_v9 = vld [vmem:[%s689_s3 + $0x18] sm:$0xff] }
  0x12   :  { %399 = vmatpush.xpose.msk.msra.mxu2 %vm99_vm0, %v38_v4  ;;  %400 = vmatpush.xpose.msk.msra.mxu3 %vm99_vm0, %v38_v4 }
  0x13   :  { %365 = vmatpush.xpose.msk.msra.mxu0 %vm99_vm0, %v38_v4  ;;  %81 = vperm.xlu1 %426, %v55_v20  }
  0x15   :  { %71 = vperm.xlu2 %427, %v53_v31  }
  0x16   :  { %401 = vmatpush.xpose.msk.msra.mxu2 %vm99_vm0, %v37_v5  ;;  %402 = vmatpush.xpose.msk.msra.mxu3 %vm99_vm0, %v37_v5 }
  0x17   :  { %366 = vmatpush.xpose.msk.msra.mxu0 %vm99_vm0, %v37_v5 }
  0x18   :  { %66 = vperm.xlu0 %425, %v52_v16  }
  0x1a   :  { %403 = vmatpush.xpose.msk.msra.mxu2 %vm99_vm0, %v36_v6  ;;  %404 = vmatpush.xpose.msk.msra.mxu3 %vm99_vm0, %v36_v6 }
  0x1b   :  { %367 = vmatpush.xpose.msk.msra.mxu0 %vm99_vm0, %v36_v6  ;;  %61 = vperm.xlu1 %426, %v51_v26   ;;  %v221_v6 = vld [vmem:[%s689_s3] sm:$0xff] }
  0x1c   :  { %v295_v26 = vld [vmem:[%s691_s5] sm:$0xf]  ;;  %s350_s5 = sshll.u32 %s459_s9, 4  ;;  %s351_s5 = int_to_ptr.vmem [resolvable:$true] %s350_s5 }
  0x1d   :  { %246 = vperm.xlu2 %427, %v228_v34  }
  0x1e   :  { %405 = vmatpush.xpose.msk.msra.mxu2 %vm99_vm0, %v35_v7  ;;  %406 = vmatpush.xpose.msk.msra.mxu3 %vm99_vm0, %v35_v7 }
  0x1f   :  { %368 = vmatpush.xpose.msk.msra.mxu0 %vm99_vm0, %v35_v7  ;;  %v222_v7 = vld [vmem:[%s689_s3 + $0x8] sm:$0xff] }
  0x20   :  { %241 = vperm.xlu0 %425, %v227_v21  }
  0x22   :  { %407 = vmatpush.xpose.msk.msra.mxu2 %vm99_vm0, %v34_v8  ;;  %408 = vmatpush.xpose.msk.msra.mxu3 %vm99_vm0, %v34_v8 }
  0x23   :  { %369 = vmatpush.xpose.msk.msra.mxu0 %vm99_vm0, %v34_v8  ;;  %236 = vperm.xlu1 %426, %v226_v32   ;;  %v223_v8 = vld [vmem:[%s689_s3 + $0x10] sm:$0xff] }
  0x25   :  { %231 = vperm.xlu2 %427, %v225_v36  }
  0x26   :  { %409 = vmatpush.xpose.msk.msra.mxu2 %vm99_vm0, %v33_v11  ;;  %410 = vmatpush.xpose.msk.msra.mxu3 %vm99_vm0, %v33_v11 }
  0x27   :  { %370 = vmatpush.xpose.msk.msra.mxu0 %vm99_vm0, %v33_v11 }
  0x28   :  { %299 = vperm.xlu0 %425, %v296_v27  }
  0x2a   :  { %411 = vmatpush.xpose.msk.msra.mxu2 %vm99_vm0, %v32_v12  ;;  %412 = vmatpush.xpose.msk.msra.mxu3 %vm99_vm0, %v32_v12 }
  0x2b   :  { %371 = vmatpush.xpose.msk.msra.mxu0 %vm99_vm0, %v32_v12 }
  0x2e   :  { %413 = vmatpush.xpose.msk.msra.mxu2 %vm99_vm0, %v31_v14  ;;  %414 = vmatpush.xpose.msk.msra.mxu3 %vm99_vm0, %v31_v14 }
  0x2f   :  { %372 = vmatpush.xpose.msk.msra.mxu0 %vm99_vm0, %v31_v14 }
  0x32   :  { %415 = vmatpush.xpose.msk.msra.mxu2 %vm99_vm0, %v30_v15  ;;  %416 = vmatpush.xpose.msk.msra.mxu3 %vm99_vm0, %v30_v15 }
  0x33   :  { %373 = vmatpush.xpose.msk.msra.mxu0 %vm99_vm0, %v30_v15 }
  0x36   :  { %417 = vmatpush.xpose.msk.msra.mxu2 %vm99_vm0, %v29_v18  ;;  %418 = vmatpush.xpose.msk.msra.mxu3 %vm99_vm0, %v29_v18 }
  0x37   :  { %374 = vmatpush.xpose.msk.msra.mxu0 %vm99_vm0, %v29_v18 }
  0x3a   :  { %419 = vmatpush.xpose.msk.msra.mxu2 %vm99_vm0, %v28_v19  ;;  %420 = vmatpush.xpose.msk.msra.mxu3 %vm99_vm0, %v28_v19 }
  0x3b   :  { %375 = vmatpush.xpose.msk.msra.mxu0 %vm99_vm0, %v28_v19 }
  0x3e   :  { %421 = vmatpush.xpose.msk.msra.mxu2 %vm99_vm0, %v27_v22  ;;  %422 = vmatpush.xpose.msk.msra.mxu3 %vm99_vm0, %v27_v22 }
  0x3f   :  { %376 = vmatpush.xpose.msk.msra.mxu0 %vm99_vm0, %v27_v22 }
  0x41   :  { %378 = vmatmul.msk.f32.vlgmr.msra.gmra.mxu2 %vm99_vm0, %v44_v23  ;;  %383 = vmatmul.msk.f32.vlgmr.msra.gmra.mxu3 %vm99_vm0, %v49_v24 }
  0x42   :  { %377 = vmatmul.msk.f32.vlgmr.msra.gmra.mxu0 %vm99_vm0, %v43_v25 }
  0x49   :  { %379 = vmatmul.msk.f32.gmra.mxu2 %vm99_vm0, %v45_v29  ;;  %384 = vmatmul.msk.f32.gmra.mxu3 %vm99_vm0, %v50_v30 }
  0x51   :  { %380 = vmatmul.msk.f32.gmra.mxu2 %vm99_vm0, %v46_v33 }
  0x59   :  { %381 = vmatmul.msk.f32.gmra.mxu2 %vm99_vm0, %v47_v35 }
  0x61   :  { %382 = vmatmul.msk.f32.gmra.mxu2 %vm99_vm0, %v48_v37 }
  0x67   :  { %v77_v50 = vpop.permute.xlu2 %76 }
  0x6f   :  { %v72_v56 = vpop.permute.xlu2 %71 }
  0x77   :  { %v247_v13 = vpop.permute.xlu2 %246 }
  0x7a   :  { %v97_v38 = vpop.permute.xlu0 %96 }
  0x7d   :  { %v87_v49 = vpop.permute.xlu1 %86 }
  0x7f   :  { %v232_v21 = vpop.permute.xlu2 %231 }
  0x82   :  { %v92_v41 = vpop.permute.xlu0 %91 }
  0x85   :  { %v82_v52 = vpop.permute.xlu1 %81 }
  0x8a   :  { %v67_v59 = vpop.permute.xlu0 %66 }
  0x8d   :  { %v62_v1 = vpop.permute.xlu1 %61 }
  0x92   :  { %v242_v14 = vpop.permute.xlu0 %241 }
  0x95   :  { %v237_v18 = vpop.permute.xlu1 %236 }
  0x9a   :  { %v300_v27 = vpop.permute.xlu0 %299 }
  0xbf   :  { %v189_v62 = vpop.f32.mrf.mxu0 }
  0xc0   :  { %v190_v3 = vadd.f32 %v189_v62, %v62_v1 }
  0xc2   :  { %v213_v5 = vmax.f32 %v190_v3, 0.0 }
  0xc4   :  { %v192_v39 = vpop.f32.mrf.mxu2  ;;  %v207_v40 = vpop.f32.mrf.mxu3 }
  0xc5   :  { %v208_v42 = vadd.f32 %v207_v40, %v92_v41  ;;  %v193_v63 = vadd.f32 %v192_v39, %v67_v59 }
  0xc7   :  { %v219_v46 = vmax.f32 %v208_v42, 0.0  ;;  %v214_v4 = vmax.f32 %v193_v63, 0.0 }
  0xcc   :  { %v195_v43 = vpop.f32.mrf.mxu2  ;;  %v210_v44 = vpop.f32.mrf.mxu3 }
  0xcd   :  { %v211_v45 = vadd.f32 %v210_v44, %v97_v38  ;;  %v196_v60 = vadd.f32 %v195_v43, %v72_v56 }
  0xcf   :  { %v220_v47 = vmax.f32 %v211_v45, 0.0  ;;  %v215_v2 = vmax.f32 %v196_v60, 0.0 }
  0xd1   :  { %270 = vmatpush.msra.mxu1 %v220_v47 }
  0xd3   :  { %271 = vmatpush.msra.mxu1 %v219_v46 }
  0xd4   :  { %v198_v48 = vpop.f32.mrf.mxu2 }
  0xd5   :  { %v199_v57 = vadd.f32 %v198_v48, %v77_v50 }
  0xd7   :  { %v216_v0 = vmax.f32 %v199_v57, 0.0 }
  0xdc   :  { %v201_v51 = vpop.f32.mrf.mxu2 }
  0xdd   :  { %v202_v54 = vadd.f32 %v201_v51, %v82_v52 }
  0xdf   :  { %v217_v61 = vmax.f32 %v202_v54, 0.0 }
  0xe4   :  { %v204_v53 = vpop.f32.mrf.mxu2 }
  0xe5   :  { %v205_v55 = vadd.f32 %v204_v53, %v87_v49 }
  0xe7   :  { %v218_v58 = vmax.f32 %v205_v55, 0.0 }
  0xe9   :  { %272 = vmatpush.msra.mxu1 %v218_v58 }
  0xeb   :  { %273 = vmatpush.msra.mxu1 %v217_v61 }
  0xed   :  { %274 = vmatpush.msra.mxu1 %v216_v0 }
  0xef   :  { %275 = vmatpush.msra.mxu1 %v215_v2 }
  0xf1   :  { %276 = vmatpush.msra.mxu1 %v214_v4 }
  0xf3   :  { %277 = vmatpush.msra.mxu1 %v213_v5 }
  0xf4   :  { %385 = vmatmul.msk.f32.vlgmr.msra.gmra.mxu1 %vm249_vm1, %v221_v6 }
  0xfc   :  { %386 = vmatmul.msk.f32.gmra.mxu1 %vm249_vm1, %v222_v7 }
 0x104   :  { %387 = vmatmul.msk.f32.gmra.mxu1 %vm249_vm1, %v223_v8 }
 0x10c   :  { %388 = vmatmul.msk.f32.gmra.mxu1 %vm249_vm1, %v224_v9 }
 0x171   :  { %v279_v10 = vpop.f32.mrf.mxu1 }
 0x172   :  { %v280_v22 = vadd.f32 %v279_v10, %v232_v21 }
 0x174   :  { %v291_v25 = vmax.f32 %v280_v22, 0.0 }
 0x179   :  { %v282_v11 = vpop.f32.mrf.mxu1 }
 0x17a   :  { %v283_v19 = vadd.f32 %v282_v11, %v237_v18 }
 0x17c   :  { %v292_v24 = vmax.f32 %v283_v19, 0.0 }
 0x181   :  { %v285_v12 = vpop.f32.mrf.mxu1 }
 0x182   :  { %v286_v16 = vadd.f32 %v285_v12, %v242_v14 }
 0x184   :  { %v293_v23 = vmax.f32 %v286_v16, 0.0 }
 0x189   :  { %v288_v15 = vpop.f32.mrf.mxu1 }
 0x18a   :  { %v289_v17 = vadd.f32 %v288_v15, %v247_v13 }
 0x18c   :  { %v294_v20 = vmax.f32 %v289_v17, 0.0 }
 0x18e   :  { %317 = vmatpush.msrb.mxu1 %v294_v20 }
 0x190   :  { %318 = vmatpush.msrb.mxu1 %v293_v23 }
 0x192   :  { %319 = vmatpush.msrb.mxu1 %v292_v24 }
 0x194   :  { %320 = vmatpush.msrb.mxu1 %v291_v25 }
 0x195   :  { %389 = vmatmul.msk.f32.vlgmr.msrb.gmra.mxu1 %vm99_vm0, %v295_v26 }
 0x212   :  { %v322_v28 = vpop.f32.mrf.mxu1 }
 0x213   :  { %v323_v29 = vadd.f32 %v322_v28, %v300_v27 }
 0x215   :  { %v390_v30 = vmul.f32 -1.442695, %v323_v29 }
 0x217   :  { %428 = vpow2.f32 %v390_v30 }
 0x21d   :  { %v429_v31 = vpop.eup %428 }
 0x21e   :  { %v328_v32 = vadd.f32 1.0, %v429_v31 }
 0x220   :  { %430 = vrcp.f32 %v328_v32  ;;  %v340_v36 = vand.u32 2147483648, %v328_v32  ;;  %v338_v38 = vand.u32 2147483647, %v328_v32  ;;  %vm334_vm3 = vweird.f32 %v328_v32 }
 0x222   :  { %v341_v40 = vor.u32 1.1754944e-38, %v340_v36  ;;  %vm339_vm5 = vcmp.eq.f32.partialorder %v338_v38, 8.507059e+37 }
 0x226   :  { %v431_v33 = vpop.eup %430 }
 0x227   :  { %v330_v34 = vmul.f32 %v431_v33, %v328_v32  ;;  %vm335_vm2 = vweird.f32 %v431_v33 }
 0x228   :  { %vm336_vm4 = vmor %vm334_vm3, %vm335_vm2 }
 0x229   :  { %v331_v35 = vsub.f32 1.0, %v330_v34 }
 0x22b   :  { %v332_v37 = vmul.f32 %v431_v33, %v331_v35 }
 0x22d   :  { %v333_v39 = vadd.f32 %v431_v33, %v332_v37 }
 0x22f   :  { %v337_v41 = vsel %vm336_vm4, %v431_v33, %v333_v39 }
 0x230   :  { %v342_v42 = vsel %vm339_vm5, %v341_v40, %v337_v41 }
 0x231   :  { %344 = vst [vmem:[#allocation2] sm:$0xf] %v342_v42 }
 0x232   :  { %355 = dma.vmem_to_hbm [thread:$0]  %s351_s5, 64, %s353_s12, [#allocation3]  }
 0x233   :  { %456 = dma.done.wait [#allocation3], 64  }
 0x234   :  { %457 = vsyncadd [#allocation3], 4294967232 }
 0x235   :  { %360 = vsyncpa [#allocation3], 1 }

</bundles_post_ra>
